<compile_context>
chip_gen: v7x
topology: tpu7x:2x2x1
jax: 0.10.0
libtpu: 0.0.40
codegen_flags: <defaults>
</compile_context>

<pallas_src>
import jax
import jax.numpy as jnp
from jax.experimental import pallas as pl
from jax.experimental.pallas import tpu as pltpu


def _layer(h, w_ref, b_ref):
    acc = jnp.dot(h.astype(w_ref.dtype), w_ref[...],
                  preferred_element_type=jnp.float32)
    return jnp.maximum(acc + b_ref[...].astype(jnp.float32), 0.0)


def _rti_encoder_kernel(x_ref,
                        w1_ref, b1_ref,
                        w2_ref, b2_ref,
                        w3_ref, b3_ref,
                        w4_ref, b4_ref,
                        o_ref):
    """Fused 4x (Linear + ReLU) over one (packed) row tile."""
    h = x_ref[...]
    h = _layer(h, w1_ref, b1_ref)
    h = _layer(h, w2_ref, b2_ref)
    h = _layer(h, w3_ref, b3_ref)
    h = _layer(h, w4_ref, b4_ref)
    o_ref[...] = h.astype(o_ref.dtype)


def rti_encoder_forward(lights_rgb, params, *, tile_m=1024, pack=8):
    """Apply the RtiEncoder MLP to lights_rgb (..., input_channels).

    params: dict with w1..w4 of shape (in, out) (i.e. pre-transposed so the
    kernel computes x @ W) and b1..b4 of shape (1, out).
    """
    orig_shape = lights_rgb.shape
    in_ch = orig_shape[-1]
    latent_dim = params["w4"].shape[1]

    x2d = lights_rgb.reshape(-1, in_ch)
    m = x2d.shape[0]

    # ---- block-diagonal channel packing: fold `pack` rows into the lane axis ----
    pin = pack * in_ch            # 256 for in_ch=32, pack=8
    pout = pack * latent_dim      # 128 for latent=16, pack=8  -> lane-dense output

    mp = pl.cdiv(m, pack)                         # packed rows actually needed
    tile_m = min(tile_m, pl.cdiv(mp, 8) * 8)      # don't over-pad small inputs
    tile_m = max(8, (tile_m // 8) * 8)            # (8,128) rule: multiple of 8
    mp_pad = pl.cdiv(mp, tile_m) * tile_m
    m_pad = mp_pad * pack

    if m_pad != m:
        x2d = jnp.pad(x2d, ((0, m_pad - m), (0, 0)))
    x_packed = x2d.reshape(mp_pad, pin)

    def _block_diag(w):           # (fi, fo) -> (pack*fi, pack*fo), w on the diagonal
        return jnp.kron(jnp.eye(pack, dtype=w.dtype), w)

    def _tile_bias(b):            # (1, fo) -> (1, pack*fo)
        return jnp.tile(b.reshape(1, -1), (1, pack))

    wp = {f"w{i}": _block_diag(params[f"w{i}"]) for i in range(1, 5)}
    bp = {f"b{i}": _tile_bias(params[f"b{i}"]) for i in range(1, 5)}

    def full_spec(arr):
        # whole weight / bias resident in VMEM for every grid step
        return pl.BlockSpec(arr.shape, lambda i: (0, 0))

    grid = (mp_pad // tile_m,)

    flops = 2 * mp_pad * (3 * pin * pin + pin * pout)
    bytes_io = (mp_pad * (pin + pout) * x_packed.dtype.itemsize
                + sum(int(v.size) * v.dtype.itemsize for v in wp.values())
                + sum(int(v.size) * v.dtype.itemsize for v in bp.values()))
    cost = pl.CostEstimate(flops=flops, transcendentals=0,
                           bytes_accessed=bytes_io)

    out_packed = pl.pallas_call(
        _rti_encoder_kernel,
        out_shape=jax.ShapeDtypeStruct((mp_pad, pout), lights_rgb.dtype),
        grid_spec=pltpu.PrefetchScalarGridSpec(
            num_scalar_prefetch=0,
            grid=grid,
            in_specs=[
                pl.BlockSpec((tile_m, pin), lambda i: (i, 0)),   # packed x tile
                full_spec(wp["w1"]), full_spec(bp["b1"]),
                full_spec(wp["w2"]), full_spec(bp["b2"]),
                full_spec(wp["w3"]), full_spec(bp["b3"]),
                full_spec(wp["w4"]), full_spec(bp["b4"]),
            ],
            out_specs=pl.BlockSpec((tile_m, pout), lambda i: (i, 0)),
        ),
        compiler_params=pltpu.CompilerParams(
            dimension_semantics=("parallel",)),   # shards rows across v7x's 2 TCs
        cost_estimate=cost,
    )(x_packed,
      wp["w1"], bp["b1"],
      wp["w2"], bp["b2"],
      wp["w3"], bp["b3"],
      wp["w4"], bp["b4"])

    out2d = out_packed.reshape(m_pad, latent_dim)[:m]
    return out2d.reshape(*orig_shape[:-1], latent_dim)


def init_rti_encoder_params(key, input_channels, latent_dim, dtype=jnp.float32):
    """nn.Linear-default init U(-1/sqrt(fan_in), 1/sqrt(fan_in)).

    Weights stored transposed (fan_in, fan_out) so the kernel does x @ W.
    Biases stored as (1, fan_out).
    """
    dims = [(input_channels, input_channels),
            (input_channels, input_channels),
            (input_channels, input_channels),
            (input_channels, latent_dim)]
    params = {}
    for idx, (fan_in, fan_out) in enumerate(dims, start=1):
        key, kw, kb = jax.random.split(key, 3)
        bound = 1.0 / jnp.sqrt(jnp.array(fan_in, dtype=jnp.float32))
        params[f"w{idx}"] = jax.random.uniform(
            kw, (fan_in, fan_out), dtype=dtype, minval=-bound, maxval=bound)
        params[f"b{idx}"] = jax.random.uniform(
            kb, (1, fan_out), dtype=dtype, minval=-bound, maxval=bound)
    return params


def _reference_forward(x, params):
    h = x.reshape(-1, x.shape[-1]).astype(jnp.float32)
    for i in range(1, 5):
        h = jnp.maximum(h @ params[f"w{i}"] + params[f"b{i}"], 0.0)
    return h.reshape(*x.shape[:-1], params["w4"].shape[1])


if __name__ == "__main__":
    key = jax.random.PRNGKey(0)
    k_params, k_x = jax.random.split(key)

    input_channels = 32
    latent_dim = 16
    batch, seq = 2, 64          # lights_rgb: (batch, num_lights, input_channels)

    params = init_rti_encoder_params(k_params, input_channels, latent_dim)
    lights_rgb = jax.random.normal(
        k_x, (batch, seq, input_channels), dtype=jnp.float32)

    out = rti_encoder_forward(lights_rgb, params)
    out = jax.block_until_ready(out)

    ref = _reference_forward(lights_rgb, params)
    assert out.shape == (batch, seq, latent_dim), out.shape
    assert jnp.allclose(out, ref, atol=1e-5, rtol=1e-5), "mismatch vs reference"

    print("KERNEL_OK")
</pallas_src>

<mosaic_0001>
module attributes {stable_mosaic.version = 11 : i64} {
  func.func @_rti_encoder_kernel(%arg0: i32, %arg1: memref<16x256xf32, #tpu.memory_space<vmem>>, %arg2: memref<256x256xf32, #tpu.memory_space<vmem>>, %arg3: memref<1x256xf32, #tpu.memory_space<vmem>>, %arg4: memref<256x256xf32, #tpu.memory_space<vmem>>, %arg5: memref<1x256xf32, #tpu.memory_space<vmem>>, %arg6: memref<256x256xf32, #tpu.memory_space<vmem>>, %arg7: memref<1x256xf32, #tpu.memory_space<vmem>>, %arg8: memref<256x128xf32, #tpu.memory_space<vmem>>, %arg9: memref<1x128xf32, #tpu.memory_space<vmem>>, %arg10: memref<16x128xf32, #tpu.memory_space<vmem>>) attributes {dimension_semantics = [#tpu.dimension_semantics<parallel>], iteration_bounds = array<i64: 1>, scalar_prefetch = 0 : i64, scratch_operands = 0 : i64, tpu.core_type = #tpu.core_type<tc>, window_params = [{transform_indices = @transform_0, window_bounds = array<i64: 16, 256>}, {pipeline_mode = #tpu.pipeline_mode<synchronous>, transform_indices = @transform_1, window_bounds = array<i64: 256, 256>}, {pipeline_mode = #tpu.pipeline_mode<synchronous>, transform_indices = @transform_2, window_bounds = array<i64: 1, 256>}, {pipeline_mode = #tpu.pipeline_mode<synchronous>, transform_indices = @transform_3, window_bounds = array<i64: 256, 256>}, {pipeline_mode = #tpu.pipeline_mode<synchronous>, transform_indices = @transform_4, window_bounds = array<i64: 1, 256>}, {pipeline_mode = #tpu.pipeline_mode<synchronous>, transform_indices = @transform_5, window_bounds = array<i64: 256, 256>}, {pipeline_mode = #tpu.pipeline_mode<synchronous>, transform_indices = @transform_6, window_bounds = array<i64: 1, 256>}, {pipeline_mode = #tpu.pipeline_mode<synchronous>, transform_indices = @transform_7, window_bounds = array<i64: 256, 128>}, {pipeline_mode = #tpu.pipeline_mode<synchronous>, transform_indices = @transform_8, window_bounds = array<i64: 1, 128>}, {transform_indices = @transform_9, window_bounds = array<i64: 16, 128>}]} {
    %c0 = arith.constant 0 : index
    %c0_0 = arith.constant 0 : index
    %0 = vector.load %arg1[%c0, %c0_0] : memref<16x256xf32, #tpu.memory_space<vmem>>, vector<16x256xf32>
    %c0_1 = arith.constant 0 : index
    %c0_2 = arith.constant 0 : index
    %1 = vector.load %arg2[%c0_1, %c0_2] : memref<256x256xf32, #tpu.memory_space<vmem>>, vector<256x256xf32>
    %cst = arith.constant dense<0.000000e+00> : vector<16x256xf32>
    %2 = tpu.matmul %0, %1, %cst {dimension_numbers = #tpu.dot_dimension_numbers<[1], [0], [0], [1], [0, 0, 1, 1], [], []>} : vector<16x256xf32>, vector<256x256xf32>, vector<16x256xf32> -> vector<16x256xf32>
    %c0_3 = arith.constant 0 : index
    %c0_4 = arith.constant 0 : index
    %3 = vector.load %arg3[%c0_3, %c0_4] : memref<1x256xf32, #tpu.memory_space<vmem>>, vector<1x256xf32>
    %4 = vector.broadcast %3 : vector<1x256xf32> to vector<16x256xf32>
    %5 = arith.addf %2, %4 : vector<16x256xf32>
    %cst_5 = arith.constant 0.000000e+00 : f32
    %6 = vector.broadcast %cst_5 : f32 to vector<16x256xf32>
    %7 = arith.maximumf %5, %6 : vector<16x256xf32>
    %c0_6 = arith.constant 0 : index
    %c0_7 = arith.constant 0 : index
    %8 = vector.load %arg4[%c0_6, %c0_7] : memref<256x256xf32, #tpu.memory_space<vmem>>, vector<256x256xf32>
    %cst_8 = arith.constant dense<0.000000e+00> : vector<16x256xf32>
    %9 = tpu.matmul %7, %8, %cst_8 {dimension_numbers = #tpu.dot_dimension_numbers<[1], [0], [0], [1], [0, 0, 1, 1], [], []>} : vector<16x256xf32>, vector<256x256xf32>, vector<16x256xf32> -> vector<16x256xf32>
    %c0_9 = arith.constant 0 : index
    %c0_10 = arith.constant 0 : index
    %10 = vector.load %arg5[%c0_9, %c0_10] : memref<1x256xf32, #tpu.memory_space<vmem>>, vector<1x256xf32>
    %11 = vector.broadcast %10 : vector<1x256xf32> to vector<16x256xf32>
    %12 = arith.addf %9, %11 : vector<16x256xf32>
    %cst_11 = arith.constant 0.000000e+00 : f32
    %13 = vector.broadcast %cst_11 : f32 to vector<16x256xf32>
    %14 = arith.maximumf %12, %13 : vector<16x256xf32>
    %c0_12 = arith.constant 0 : index
    %c0_13 = arith.constant 0 : index
    %15 = vector.load %arg6[%c0_12, %c0_13] : memref<256x256xf32, #tpu.memory_space<vmem>>, vector<256x256xf32>
    %cst_14 = arith.constant dense<0.000000e+00> : vector<16x256xf32>
    %16 = tpu.matmul %14, %15, %cst_14 {dimension_numbers = #tpu.dot_dimension_numbers<[1], [0], [0], [1], [0, 0, 1, 1], [], []>} : vector<16x256xf32>, vector<256x256xf32>, vector<16x256xf32> -> vector<16x256xf32>
    %c0_15 = arith.constant 0 : index
    %c0_16 = arith.constant 0 : index
    %17 = vector.load %arg7[%c0_15, %c0_16] : memref<1x256xf32, #tpu.memory_space<vmem>>, vector<1x256xf32>
    %18 = vector.broadcast %17 : vector<1x256xf32> to vector<16x256xf32>
    %19 = arith.addf %16, %18 : vector<16x256xf32>
    %cst_17 = arith.constant 0.000000e+00 : f32
    %20 = vector.broadcast %cst_17 : f32 to vector<16x256xf32>
    %21 = arith.maximumf %19, %20 : vector<16x256xf32>
    %c0_18 = arith.constant 0 : index
    %c0_19 = arith.constant 0 : index
    %22 = vector.load %arg8[%c0_18, %c0_19] : memref<256x128xf32, #tpu.memory_space<vmem>>, vector<256x128xf32>
    %cst_20 = arith.constant dense<0.000000e+00> : vector<16x128xf32>
    %23 = tpu.matmul %21, %22, %cst_20 {dimension_numbers = #tpu.dot_dimension_numbers<[1], [0], [0], [1], [0, 0, 1, 1], [], []>} : vector<16x256xf32>, vector<256x128xf32>, vector<16x128xf32> -> vector<16x128xf32>
    %c0_21 = arith.constant 0 : index
    %c0_22 = arith.constant 0 : index
    %24 = vector.load %arg9[%c0_21, %c0_22] : memref<1x128xf32, #tpu.memory_space<vmem>>, vector<1x128xf32>
    %25 = vector.broadcast %24 : vector<1x128xf32> to vector<16x128xf32>
    %26 = arith.addf %23, %25 : vector<16x128xf32>
    %cst_23 = arith.constant 0.000000e+00 : f32
    %27 = vector.broadcast %cst_23 : f32 to vector<16x128xf32>
    %28 = arith.maximumf %26, %27 : vector<16x128xf32>
    %c0_24 = arith.constant 0 : index
    %c0_25 = arith.constant 0 : index
    %29 = vector.load %arg10[%c0_24, %c0_25] : memref<16x128xf32, #tpu.memory_space<vmem>>, vector<16x128xf32>
    tpu.vector_store %arg10[%c0_24, %c0_25], %28 {strides = array<i32>} : memref<16x128xf32, #tpu.memory_space<vmem>>, vector<16x128xf32>,
    return
  }
  func.func @transform_0(%arg0: i32) -> (i32, i32) {
    %c0_i32 = arith.constant 0 : i32
    %c0_i32_0 = arith.constant 0 : i32
    return %arg0, %c0_i32 : i32, i32
  }
  func.func @transform_1(%arg0: i32) -> (i32, i32) {
    %c0_i32 = arith.constant 0 : i32
    %c0_i32_0 = arith.constant 0 : i32
    %c0_i32_1 = arith.constant 0 : i32
    return %c0_i32, %c0_i32_0 : i32, i32
  }
  func.func @transform_2(%arg0: i32) -> (i32, i32) {
    %c0_i32 = arith.constant 0 : i32
    %c0_i32_0 = arith.constant 0 : i32
    %c0_i32_1 = arith.constant 0 : i32
    return %c0_i32, %c0_i32_0 : i32, i32
  }
  func.func @transform_3(%arg0: i32) -> (i32, i32) {
    %c0_i32 = arith.constant 0 : i32
    %c0_i32_0 = arith.constant 0 : i32
    %c0_i32_1 = arith.constant 0 : i32
    return %c0_i32, %c0_i32_0 : i32, i32
  }
  func.func @transform_4(%arg0: i32) -> (i32, i32) {
    %c0_i32 = arith.constant 0 : i32
    %c0_i32_0 = arith.constant 0 : i32
    %c0_i32_1 = arith.constant 0 : i32
    return %c0_i32, %c0_i32_0 : i32, i32
  }
  func.func @transform_5(%arg0: i32) -> (i32, i32) {
    %c0_i32 = arith.constant 0 : i32
    %c0_i32_0 = arith.constant 0 : i32
    %c0_i32_1 = arith.constant 0 : i32
    return %c0_i32, %c0_i32_0 : i32, i32
  }
  func.func @transform_6(%arg0: i32) -> (i32, i32) {
    %c0_i32 = arith.constant 0 : i32
    %c0_i32_0 = arith.constant 0 : i32
    %c0_i32_1 = arith.constant 0 : i32
    return %c0_i32, %c0_i32_0 : i32, i32
  }
  func.func @transform_7(%arg0: i32) -> (i32, i32) {
    %c0_i32 = arith.constant 0 : i32
    %c0_i32_0 = arith.constant 0 : i32
    %c0_i32_1 = arith.constant 0 : i32
    return %c0_i32, %c0_i32_0 : i32, i32
  }
  func.func @transform_8(%arg0: i32) -> (i32, i32) {
    %c0_i32 = arith.constant 0 : i32
    %c0_i32_0 = arith.constant 0 : i32
    %c0_i32_1 = arith.constant 0 : i32
    return %c0_i32, %c0_i32_0 : i32, i32
  }
  func.func @transform_9(%arg0: i32) -> (i32, i32) {
    %c0_i32 = arith.constant 0 : i32
    %c0_i32_0 = arith.constant 0 : i32
    return %arg0, %c0_i32 : i32, i32
  }
}

</mosaic_0001>

<bundles_post_ra>
// kernel: tpu_custom_call.1
= control target key start
LH: loop header
LB: loop body
LE: loop exit
PB: predicated region body
PF: predicated region fallthrough
CT: control target
= control target key end

     0   :  { %14 = vsyncpa [#allocation3], 0  ;;  %s1312_s0 = inlined_call_operand.hbm [shape: f32[16,256], index: 0, kind: input, shape index: {}]   ;;  %s1313_s1 = inlined_call_operand.hbm [shape: f32[256,256], index: 1, kind: input, shape index: {}]   ;;  %s1314_s2 = inlined_call_operand.vmem [shape: f32[1,256], index: 2, kind: input, shape index: {}]   ;;  %s1315_s3 = inlined_call_operand.hbm [shape: f32[256,256], index: 3, kind: input, shape index: {}]   ;;  %s1316_s4 = inlined_call_operand.vmem [shape: f32[1,256], index: 4, kind: input, shape index: {}]   ;;  %s1317_s5 = inlined_call_operand.hbm [shape: f32[256,256], index: 5, kind: input, shape index: {}]   ;;  %s1318_s6 = inlined_call_operand.vmem [shape: f32[1,256], index: 6, kind: input, shape index: {}]   ;;  %s1319_s7 = inlined_call_operand.hbm [shape: f32[256,128], index: 7, kind: input, shape index: {}]   ;;  %s1320_s8 = inlined_call_operand.vmem [shape: f32[1,128], index: 8, kind: input, shape index: {}]   ;;  %s1321_s9 = inlined_call_operand.hbm [shape: f32[16,128], index: 9, kind: output, shape index: {}]  }
   0x1   :  { %15 = vsyncpa [#allocation6], 0 }
   0x2   :  { %16 = vsyncpa [#allocation9], 0 }
   0x3   :  { %17 = vsyncpa [#allocation4], 0  ;;  %s1126_s30 = smov [#allocation5]   ;;  %s1127_s11 = smov [#allocation8]  }
   0x4   :  { %s35_s10 = sshll.u32 %s1126_s30, 4  ;;  %s63_s12 = sshll.u32 %s1127_s11, 4  ;;  %s36_s10 = int_to_ptr.vmem [resolvable:$true] %s35_s10  ;;  %s1186_s12 = int_to_ptr.vmem [resolvable:$true] %s63_s12 }
   0x5   :  { %s986_s15 = scalar_lea.hbm %s1313_s1, 8192 }
   0x6   :  { %p987_p0 = scmp.ne.s32.totalorder %s1313_s1, %s986_s15  ;;  %p990_p1 = scmp.lt.u32.totalorder %s986_s15, %s1313_s1 }
   0x8   :  { %p992_p2 = pnand %p990_p1, %p987_p0 }
   0xa   :  { %995 = shalt.err (!%p992_p2)
}
   0xb   :  { %s996_s20 = scalar_lea.vmem %s36_s10, 8192  ;;  %p1001_p4 = scmp.lt.s32.totalorder %s36_s10, %s36_s10 }
   0xc   :  { %p997_p3 = scmp.ne.s32.totalorder %s36_s10, %s996_s20  ;;  %p1002_p5 = scmp.lt.s32.totalorder %s996_s20, %s996_s20 }
   0xe   :  { %p1003_p6 = por %p1002_p5, %p1001_p4 }
  0x10   :  { %p1004_p7 = pnand %p1003_p6, %p997_p3 }
  0x12   :  { %1007 = shalt.err (!%p1004_p7)
}
  0x13   :  { %s1128_s21 = smov 256   ;;  %s1129_s22 = smov 16  }
  0x14   :  { %41 = dma.hbm_to_vmem [thread:$0]  %s1313_s1, 8192, %s36_s10, [#allocation6], %s1128_s21, %s1128_s21, %s1129_s22  }
  0x15   :  { %s1008_s27 = scalar_lea.hbm %s1317_s5, 8192 }
  0x16   :  { %p1009_p8 = scmp.ne.s32.totalorder %s1317_s5, %s1008_s27  ;;  %p1012_p9 = scmp.lt.u32.totalorder %s1008_s27, %s1317_s5 }
  0x18   :  { %p1014_p10 = pnand %p1012_p9, %p1009_p8 }
  0x1a   :  { %1017 = shalt.err (!%p1014_p10)
}
  0x1b   :  { %s1018_s13 = scalar_lea.vmem %s1186_s12, 8192  ;;  %p1023_p12 = scmp.lt.s32.totalorder %s1186_s12, %s1186_s12 }
  0x1c   :  { %p1019_p11 = scmp.ne.s32.totalorder %s1186_s12, %s1018_s13  ;;  %p1024_p13 = scmp.lt.s32.totalorder %s1018_s13, %s1018_s13 }
  0x1e   :  { %p1025_p0 = por %p1024_p13, %p1023_p12 }
  0x20   :  { %p1026_p1 = pnand %p1025_p0, %p1019_p11 }
  0x22   :  { %1029 = shalt.err (!%p1026_p1)
}
  0x23   :  { %69 = dma.hbm_to_vmem [thread:$0]  %s1317_s5, 8192, %s1186_s12, [#allocation9], %s1128_s21, %s1128_s21, %s1129_s22  }
  0x24   :  { %s1130_s14 = smov [#allocation2]   ;;  %s1131_s16 = smov [#allocation7]  }
  0x25   :  { %s23_s15 = sshll.u32 %s1130_s14, 4  ;;  %s49_s17 = sshll.u32 %s1131_s16, 4  ;;  %s24_s15 = int_to_ptr.vmem [resolvable:$true] %s23_s15  ;;  %s1223_s17 = int_to_ptr.vmem [resolvable:$true] %s49_s17 }
  0x26   :  { %s1030_s20 = scalar_lea.hbm %s1312_s0, 512 }
  0x27   :  { %p1031_p2 = scmp.ne.s32.totalorder %s1312_s0, %s1030_s20  ;;  %p1034_p3 = scmp.lt.u32.totalorder %s1030_s20, %s1312_s0 }
  0x29   :  { %p1036_p4 = pnand %p1034_p3, %p1031_p2 }
  0x2b   :  { %1039 = shalt.err (!%p1036_p4)
}
  0x2c   :  { %s1040_s5 = scalar_lea.vmem %s24_s15, 512  ;;  %p1045_p6 = scmp.lt.s32.totalorder %s24_s15, %s24_s15 }
  0x2d   :  { %p1041_p5 = scmp.ne.s32.totalorder %s24_s15, %s1040_s5  ;;  %p1046_p7 = scmp.lt.s32.totalorder %s1040_s5, %s1040_s5 }
  0x2f   :  { %p1047_p8 = por %p1046_p7, %p1045_p6 }
  0x31   :  { %p1048_p9 = pnand %p1047_p8, %p1041_p5 }
  0x33   :  { %1051 = shalt.err (!%p1048_p9)
}
  0x34   :  { %29 = dma.hbm_to_vmem [thread:$0]  %s1312_s0, 512, %s24_s15, [#allocation3], %s1128_s21, %s1128_s21, %s1129_s22  }
  0x35   :  { %s1052_s30 = scalar_lea.hbm %s1315_s3, 8192 }
  0x36   :  { %p1053_p10 = scmp.ne.s32.totalorder %s1315_s3, %s1052_s30  ;;  %p1056_p11 = scmp.lt.u32.totalorder %s1052_s30, %s1315_s3 }
  0x38   :  { %p1058_p12 = pnand %p1056_p11, %p1053_p10 }
  0x3a   :  { %1061 = shalt.err (!%p1058_p12)
}
  0x3b   :  { %s1062_s14 = scalar_lea.vmem %s1223_s17, 8192  ;;  %p1067_p0 = scmp.lt.s32.totalorder %s1223_s17, %s1223_s17 }
  0x3c   :  { %p1063_p13 = scmp.ne.s32.totalorder %s1223_s17, %s1062_s14  ;;  %p1068_p1 = scmp.lt.s32.totalorder %s1062_s14, %s1062_s14 }
  0x3e   :  { %p1069_p2 = por %p1068_p1, %p1067_p0 }
  0x40   :  { %p1070_p3 = pnand %p1069_p2, %p1063_p13 }
  0x42   :  { %1073 = shalt.err (!%p1070_p3)
}
  0x43   :  { %55 = dma.hbm_to_vmem [thread:$0]  %s1315_s3, 8192, %s1223_s17, [#allocation6], %s1128_s21, %s1128_s21, %s1129_s22  }
  0x44   :  { %s1132_s16 = smov [#allocation10]   ;;  %s1074_s23 = scalar_lea.hbm %s1319_s7, 4096 }
  0x45   :  { %s77_s18 = sshll.u32 %s1132_s16, 4  ;;  %p1075_p4 = scmp.ne.s32.totalorder %s1319_s7, %s1074_s23  ;;  %s78_s18 = int_to_ptr.vmem [resolvable:$true] %s77_s18 }
  0x46   :  { %p1078_p5 = scmp.lt.u32.totalorder %s1074_s23, %s1319_s7 }
  0x48   :  { %p1080_p6 = pnand %p1078_p5, %p1075_p4 }
  0x4a   :  { %1083 = shalt.err (!%p1080_p6)
}
  0x4b   :  { %s1084_s12 = scalar_lea.vmem %s78_s18, 4096  ;;  %p1089_p8 = scmp.lt.s32.totalorder %s78_s18, %s78_s18 }
  0x4c   :  { %p1085_p7 = scmp.ne.s32.totalorder %s78_s18, %s1084_s12  ;;  %p1090_p9 = scmp.lt.s32.totalorder %s1084_s12, %s1084_s12 }
  0x4e   :  { %p1091_p10 = por %p1090_p9, %p1089_p8 }
  0x50   :  { %p1092_p11 = pnand %p1091_p10, %p1085_p7 }
  0x52   :  { %1095 = shalt.err (!%p1092_p11)
}
  0x53   :  { %s1133_s3 = smov 128   ;;  %s1134_s21 = smov 8  }
  0x54   :  { %83 = dma.hbm_to_vmem [thread:$0]  %s1319_s7, 4096, %s78_s18, [#allocation9], %s1133_s3, %s1133_s3, %s1134_s21  }
  0x55   :  { %1118 = dma.done.wait [#allocation3], 512  }
  0x56   :  { %1119 = vsyncadd [#allocation3], 4294966784 }
  0x57   :  { %1120 = dma.done.wait [#allocation6], 16384  }
  0x58   :  { %1121 = vsyncadd [#allocation6], 4294950912 }
  0x59   :  { %1122 = dma.done.wait [#allocation9], 12288  }
  0x5a   :  { %1123 = vsyncadd [#allocation9], 4294955008  ;;  %v106_v0 = vld [vmem:[#allocation5 + $0x8] sm:$0xff]  ;;  %v108_v1 = vld [vmem:[#allocation5 + $0x18] sm:$0xff]  ;;  %s1135_s11 = smov [#allocation11]  }
  0x5b   :  { %v105_v2 = vld [vmem:[#allocation5] sm:$0xff]  ;;  %v752_v3 = vpack.c.bf16 %v108_v1, %v106_v0  ;;  %v107_v4 = vld [vmem:[#allocation5 + $0x10] sm:$0xff]  ;;  %v110_v5 = vld [vmem:[#allocation5 + $0x28] sm:$0xff]  ;;  %s699_s13 = sshll.u32 %s1135_s11, 4  ;;  %s700_s13 = int_to_ptr.vmem [resolvable:$true] %s699_s13 }
  0x5c   :  { %v112_v6 = vld [vmem:[#allocation5 + $0x38] sm:$0xff]  ;;  %v754_v7 = vpack.c.bf16 %v107_v4, %v105_v2  ;;  %v109_v9 = vld [vmem:[#allocation5 + $0x20] sm:$0xff]  ;;  %v111_v10 = vld [vmem:[#allocation5 + $0x30] sm:$0xff]  ;;  %s1096_s1 = scalar_lea.vmem %s700_s13, 256  ;;  %p1101_p13 = scmp.lt.s32.totalorder %s700_s13, %s700_s13 }
  0x5d   :  { %v756_v8 = vpack.c.bf16 %v112_v6, %v110_v5  ;;  %v114_v11 = vld [vmem:[#allocation5 + $0x48] sm:$0xff]  ;;  %753 = vmatprep.subr.bf16.mxu0 %v752_v3  ;;  %v116_v12 = vld [vmem:[#allocation5 + $0x58] sm:$0xff]  ;;  %v758_v13 = vpack.c.bf16 %v111_v10, %v109_v9  ;;  %v113_v15 = vld [vmem:[#allocation5 + $0x40] sm:$0xff]  ;;  %p1097_p12 = scmp.ne.s32.totalorder %s700_s13, %s1096_s1  ;;  %p1102_p0 = scmp.lt.s32.totalorder %s1096_s1, %s1096_s1 }
  0x5e   :  { %755 = vmatpush1.bf16.msra.mxu0 %v754_v7  ;;  %v760_v14 = vpack.c.bf16 %v116_v12, %v114_v11  ;;  %v115_v16 = vld [vmem:[#allocation5 + $0x50] sm:$0xff]  ;;  %v118_v17 = vld [vmem:[#allocation5 + $0x68] sm:$0xff]  ;;  %v120_v18 = vld [vmem:[#allocation5 + $0x78] sm:$0xff] }
  0x5f   :  { %757 = vmatprep.subr.bf16.mxu0 %v756_v8  ;;  %v762_v19 = vpack.c.bf16 %v115_v16, %v113_v15  ;;  %v764_v20 = vpack.c.bf16 %v120_v18, %v118_v17  ;;  %v117_v21 = vld [vmem:[#allocation5 + $0x60] sm:$0xff]  ;;  %v119_v22 = vld [vmem:[#allocation5 + $0x70] sm:$0xff]  ;;  %v122_v23 = vld [vmem:[#allocation5 + $0x88] sm:$0xff]  ;;  %p1103_p1 = por %p1102_p0, %p1101_p13 }
  0x60   :  { %v124_v24 = vld [vmem:[#allocation5 + $0x98] sm:$0xff]  ;;  %v766_v25 = vpack.c.bf16 %v119_v22, %v117_v21  ;;  %v121_v27 = vld [vmem:[#allocation5 + $0x80] sm:$0xff]  ;;  %v123_v28 = vld [vmem:[#allocation5 + $0x90] sm:$0xff] }
  0x61   :  { %v768_v26 = vpack.c.bf16 %v124_v24, %v122_v23  ;;  %v126_v29 = vld [vmem:[#allocation5 + $0xa8] sm:$0xff]  ;;  %v128_v30 = vld [vmem:[#allocation5 + $0xb8] sm:$0xff]  ;;  %v770_v31 = vpack.c.bf16 %v123_v28, %v121_v27  ;;  %v125_v33 = vld [vmem:[#allocation5 + $0xa0] sm:$0xff]  ;;  %p1104_p2 = pnand %p1103_p1, %p1097_p12 }
  0x62   :  { %759 = vmatpush1.bf16.msra.mxu0 %v758_v13  ;;  %v772_v32 = vpack.c.bf16 %v128_v30, %v126_v29  ;;  %v127_v34 = vld [vmem:[#allocation5 + $0xb0] sm:$0xff]  ;;  %v130_v35 = vld [vmem:[#allocation5 + $0xc8] sm:$0xff]  ;;  %v132_v36 = vld [vmem:[#allocation5 + $0xd8] sm:$0xff] }
  0x63   :  { %761 = vmatprep.subr.bf16.mxu0 %v760_v14  ;;  %v774_v37 = vpack.c.bf16 %v127_v34, %v125_v33  ;;  %v776_v38 = vpack.c.bf16 %v132_v36, %v130_v35  ;;  %v129_v39 = vld [vmem:[#allocation5 + $0xc0] sm:$0xff]  ;;  %v131_v40 = vld [vmem:[#allocation5 + $0xd0] sm:$0xff]  ;;  %v102_v41 = vld [vmem:[#allocation2 + $0x8] sm:$0xff] }
  0x64   :  { %v134_v42 = vld [vmem:[#allocation5 + $0xe8] sm:$0xff]  ;;  %v136_v43 = vld [vmem:[#allocation5 + $0xf8] sm:$0xff]  ;;  %245 = vmatprep.mubr.f32.mxu0 %v102_v41  ;;  %v133_v45 = vld [vmem:[#allocation5 + $0xe0] sm:$0xff]  ;;  %v778_v50 = vpack.c.bf16 %v131_v40, %v129_v39 }
  0x65   :  { %v263_v44 = vld [vmem:[#allocation7 + $0x8] sm:$0xff]  ;;  %v135_v46 = vld [vmem:[#allocation5 + $0xf0] sm:$0xff]  ;;  %v265_v47 = vld [vmem:[#allocation7 + $0x18] sm:$0xff]  ;;  %v780_v56 = vpack.c.bf16 %v136_v43, %v134_v42 }
  0x66   :  { %763 = vmatpush1.bf16.msra.mxu0 %v762_v19  ;;  %v262_v48 = vld [vmem:[#allocation7] sm:$0xff]  ;;  %v264_v49 = vld [vmem:[#allocation7 + $0x10] sm:$0xff]  ;;  %v816_v51 = vpack.c.bf16 %v265_v47, %v263_v44  ;;  %v267_v53 = vld [vmem:[#allocation7 + $0x28] sm:$0xff]  ;;  %v782_v0 = vpack.c.bf16 %v135_v46, %v133_v45 }
  0x67   :  { %765 = vmatprep.subr.bf16.mxu0 %v764_v20  ;;  %v818_v52 = vpack.c.bf16 %v264_v49, %v262_v48  ;;  %v269_v54 = vld [vmem:[#allocation7 + $0x38] sm:$0xff]  ;;  %v266_v55 = vld [vmem:[#allocation7 + $0x20] sm:$0xff]  ;;  %v268_v58 = vld [vmem:[#allocation7 + $0x30] sm:$0xff] }
  0x68   :  { %v820_v57 = vpack.c.bf16 %v269_v54, %v267_v53  ;;  %v271_v59 = vld [vmem:[#allocation7 + $0x48] sm:$0xff]  ;;  %v273_v60 = vld [vmem:[#allocation7 + $0x58] sm:$0xff]  ;;  %817 = vmatprep.subr.bf16.mxu1 %v816_v51  ;;  %v822_v63 = vpack.c.bf16 %v268_v58, %v266_v55  ;;  %v137_v1 = vld [vmem:[#allocation5 + $0x100] sm:$0xff] }
  0x69   :  { %v138_v61 = vld [vmem:[#allocation5 + $0x108] sm:$0xff]  ;;  %v140_v62 = vld [vmem:[#allocation5 + $0x118] sm:$0xff]  ;;  %819 = vmatpush1.bf16.msra.mxu1 %v818_v52  ;;  %v824_v2 = vpack.c.bf16 %v273_v60, %v271_v59  ;;  %v270_v3 = vld [vmem:[#allocation7 + $0x40] sm:$0xff] }
  0x6a   :  { %767 = vmatpush1.bf16.msra.mxu0 %v766_v25  ;;  %821 = vmatprep.subr.bf16.mxu1 %v820_v57  ;;  %v272_v4 = vld [vmem:[#allocation7 + $0x50] sm:$0xff]  ;;  %v784_v5 = vpack.c.bf16 %v140_v62, %v138_v61  ;;  %v275_v7 = vld [vmem:[#allocation7 + $0x68] sm:$0xff]  ;;  %v277_v8 = vld [vmem:[#allocation7 + $0x78] sm:$0xff] }
  0x6b   :  { %769 = vmatprep.subr.bf16.mxu0 %v768_v26  ;;  %v139_v6 = vld [vmem:[#allocation5 + $0x110] sm:$0xff]  ;;  %v142_v9 = vld [vmem:[#allocation5 + $0x128] sm:$0xff]  ;;  %v144_v10 = vld [vmem:[#allocation5 + $0x138] sm:$0xff]  ;;  %v826_v11 = vpack.c.bf16 %v272_v4, %v270_v3  ;;  %v828_v14 = vpack.c.bf16 %v277_v8, %v275_v7 }
  0x6c   :  { %v786_v12 = vpack.c.bf16 %v139_v6, %v137_v1  ;;  %v141_v13 = vld [vmem:[#allocation5 + $0x120] sm:$0xff]  ;;  %v276_v16 = vld [vmem:[#allocation7 + $0x70] sm:$0xff]  ;;  %v788_v17 = vpack.c.bf16 %v144_v10, %v142_v9  ;;  %v279_v19 = vld [vmem:[#allocation7 + $0x88] sm:$0xff] }
  0x6d   :  { %823 = vmatpush1.bf16.msra.mxu1 %v822_v63  ;;  %v274_v15 = vld [vmem:[#allocation7 + $0x60] sm:$0xff]  ;;  %v143_v18 = vld [vmem:[#allocation5 + $0x130] sm:$0xff]  ;;  %v281_v20 = vld [vmem:[#allocation7 + $0x98] sm:$0xff] }
  0x6e   :  { %771 = vmatpush1.bf16.msra.mxu0 %v770_v31  ;;  %825 = vmatprep.subr.bf16.mxu1 %v824_v2  ;;  %v146_v21 = vld [vmem:[#allocation5 + $0x148] sm:$0xff]  ;;  %v148_v22 = vld [vmem:[#allocation5 + $0x158] sm:$0xff]  ;;  %v830_v23 = vpack.c.bf16 %v276_v16, %v274_v15  ;;  %v790_v24 = vpack.c.bf16 %v143_v18, %v141_v13  ;;  %v145_v25 = vld [vmem:[#allocation5 + $0x140] sm:$0xff]  ;;  %v832_v26 = vpack.c.bf16 %v281_v20, %v279_v19 }
  0x6f   :  { %773 = vmatprep.subr.bf16.mxu0 %v772_v32  ;;  %v278_v27 = vld [vmem:[#allocation7 + $0x80] sm:$0xff]  ;;  %v280_v28 = vld [vmem:[#allocation7 + $0x90] sm:$0xff]  ;;  %v792_v29 = vpack.c.bf16 %v148_v22, %v146_v21  ;;  %v283_v31 = vld [vmem:[#allocation7 + $0xa8] sm:$0xff] }
  0x70   :  { %v147_v30 = vld [vmem:[#allocation5 + $0x150] sm:$0xff]  ;;  %v285_v32 = vld [vmem:[#allocation7 + $0xb8] sm:$0xff]  ;;  %v150_v33 = vld [vmem:[#allocation5 + $0x168] sm:$0xff]  ;;  %v834_v35 = vpack.c.bf16 %v280_v28, %v278_v27 }
  0x71   :  { %827 = vmatpush1.bf16.msra.mxu1 %v826_v11  ;;  %v152_v34 = vld [vmem:[#allocation5 + $0x178] sm:$0xff]  ;;  %v794_v36 = vpack.c.bf16 %v147_v30, %v145_v25  ;;  %v282_v39 = vld [vmem:[#allocation7 + $0xa0] sm:$0xff]  ;;  %v284_v40 = vld [vmem:[#allocation7 + $0xb0] sm:$0xff] }
  0x72   :  { %775 = vmatpush1.bf16.msra.mxu0 %v774_v37  ;;  %829 = vmatprep.subr.bf16.mxu1 %v828_v14  ;;  %v149_v37 = vld [vmem:[#allocation5 + $0x160] sm:$0xff]  ;;  %v796_v41 = vpack.c.bf16 %v152_v34, %v150_v33  ;;  %v151_v42 = vld [vmem:[#allocation5 + $0x170] sm:$0xff]  ;;  %v287_v43 = vld [vmem:[#allocation7 + $0xc8] sm:$0xff]  ;;  %v838_v47 = vpack.c.bf16 %v284_v40, %v282_v39 }
  0x73   :  { %777 = vmatprep.subr.bf16.mxu0 %v776_v38  ;;  %v836_v38 = vpack.c.bf16 %v285_v32, %v283_v31  ;;  %v289_v44 = vld [vmem:[#allocation7 + $0xd8] sm:$0xff]  ;;  %v154_v45 = vld [vmem:[#allocation5 + $0x188] sm:$0xff]  ;;  %v798_v48 = vpack.c.bf16 %v151_v42, %v149_v37  ;;  %v153_v49 = vld [vmem:[#allocation5 + $0x180] sm:$0xff] }
  0x74   :  { %v156_v46 = vld [vmem:[#allocation5 + $0x198] sm:$0xff]  ;;  %v286_v51 = vld [vmem:[#allocation7 + $0xc0] sm:$0xff]  ;;  %v288_v52 = vld [vmem:[#allocation7 + $0xd0] sm:$0xff] }
  0x75   :  { %831 = vmatpush1.bf16.msra.mxu1 %v830_v23  ;;  %v800_v53 = vpack.c.bf16 %v156_v46, %v154_v45  ;;  %v155_v54 = vld [vmem:[#allocation5 + $0x190] sm:$0xff]  ;;  %v291_v55 = vld [vmem:[#allocation7 + $0xe8] sm:$0xff]  ;;  %v160_v58 = vld [vmem:[#allocation5 + $0x1b8] sm:$0xff]  ;;  %v842_v59 = vpack.c.bf16 %v288_v52, %v286_v51 }
  0x76   :  { %779 = vmatpush1.bf16.msra.mxu0 %v778_v50  ;;  %833 = vmatprep.subr.bf16.mxu1 %v832_v26  ;;  %v840_v50 = vpack.c.bf16 %v289_v44, %v287_v43  ;;  %v158_v57 = vld [vmem:[#allocation5 + $0x1a8] sm:$0xff]  ;;  %v802_v60 = vpack.c.bf16 %v155_v54, %v153_v49  ;;  %v157_v61 = vld [vmem:[#allocation5 + $0x1a0] sm:$0xff]  ;;  %v159_v2 = vld [vmem:[#allocation5 + $0x1b0] sm:$0xff] }
  0x77   :  { %781 = vmatprep.subr.bf16.mxu0 %v780_v56  ;;  %v293_v56 = vld [vmem:[#allocation7 + $0xf8] sm:$0xff]  ;;  %v290_v63 = vld [vmem:[#allocation7 + $0xe0] sm:$0xff]  ;;  %v804_v1 = vpack.c.bf16 %v160_v58, %v158_v57  ;;  %v295_v3 = vld [vmem:[#allocation7 + $0x108] sm:$0xff]  ;;  %v806_v8 = vpack.c.bf16 %v159_v2, %v157_v61 }
  0x78   :  { %v844_v62 = vpack.c.bf16 %v293_v56, %v291_v55  ;;  %v297_v4 = vld [vmem:[#allocation7 + $0x118] sm:$0xff]  ;;  %v161_v9 = vld [vmem:[#allocation5 + $0x1c0] sm:$0xff]  ;;  %v163_v14 = vld [vmem:[#allocation5 + $0x1d0] sm:$0xff] }
  0x79   :  { %835 = vmatpush1.bf16.msra.mxu1 %v834_v35  ;;  %v164_v6 = vld [vmem:[#allocation5 + $0x1d8] sm:$0xff]  ;;  %v848_v10 = vpack.c.bf16 %v297_v4, %v295_v3  ;;  %v294_v11 = vld [vmem:[#allocation7 + $0x100] sm:$0xff]  ;;  %v299_v15 = vld [vmem:[#allocation7 + $0x128] sm:$0xff]  ;;  %v810_v20 = vpack.c.bf16 %v163_v14, %v161_v9 }
  0x7a   :  { %783 = vmatpush1.bf16.msra.mxu0 %v782_v0  ;;  %837 = vmatprep.subr.bf16.mxu1 %v836_v38  ;;  %v292_v0 = vld [vmem:[#allocation7 + $0xf0] sm:$0xff]  ;;  %v301_v16 = vld [vmem:[#allocation7 + $0x138] sm:$0xff]  ;;  %v165_v21 = vld [vmem:[#allocation5 + $0x1e0] sm:$0xff] }
  0x7b   :  { %785 = vmatprep.subr.bf16.mxu0 %v784_v5  ;;  %v162_v5 = vld [vmem:[#allocation5 + $0x1c8] sm:$0xff]  ;;  %v846_v7 = vpack.c.bf16 %v292_v0, %v290_v63  ;;  %v168_v18 = vld [vmem:[#allocation5 + $0x1f8] sm:$0xff]  ;;  %v852_v22 = vpack.c.bf16 %v301_v16, %v299_v15  ;;  %v298_v23 = vld [vmem:[#allocation7 + $0x120] sm:$0xff] }
  0x7c   :  { %v808_v13 = vpack.c.bf16 %v164_v6, %v162_v5  ;;  %v167_v26 = vld [vmem:[#allocation5 + $0x1f0] sm:$0xff]  ;;  %v303_v27 = vld [vmem:[#allocation7 + $0x148] sm:$0xff]  ;;  %v305_v28 = vld [vmem:[#allocation7 + $0x158] sm:$0xff] }
  0x7d   :  { %839 = vmatpush1.bf16.msra.mxu1 %v838_v47  ;;  %v814_v30 = vpack.c.bf16 %v167_v26, %v165_v21  ;;  %v856_v31 = vpack.c.bf16 %v305_v28, %v303_v27  ;;  %v302_v32 = vld [vmem:[#allocation7 + $0x140] sm:$0xff]  ;;  %v304_v33 = vld [vmem:[#allocation7 + $0x150] sm:$0xff]  ;;  %v307_v34 = vld [vmem:[#allocation7 + $0x168] sm:$0xff] }
  0x7e   :  { %787 = vmatpush1.bf16.msra.mxu0 %v786_v12  ;;  %841 = vmatprep.subr.bf16.mxu1 %v840_v50  ;;  %v296_v12 = vld [vmem:[#allocation7 + $0x110] sm:$0xff]  ;;  %v309_v35 = vld [vmem:[#allocation7 + $0x178] sm:$0xff]  ;;  %v101_v37 = vld [vmem:[#allocation2] sm:$0xff] }
  0x7f   :  { %789 = vmatprep.subr.bf16.mxu0 %v788_v17  ;;  %v166_v17 = vld [vmem:[#allocation5 + $0x1e8] sm:$0xff]  ;;  %v850_v19 = vpack.c.bf16 %v296_v12, %v294_v11  ;;  %v860_v38 = vpack.c.bf16 %v309_v35, %v307_v34  ;;  %v306_v39 = vld [vmem:[#allocation7 + $0x160] sm:$0xff]  ;;  %v308_v40 = vld [vmem:[#allocation7 + $0x170] sm:$0xff] }
  0x80   :  { %v812_v25 = vpack.c.bf16 %v168_v18, %v166_v17  ;;  %v311_v42 = vld [vmem:[#allocation7 + $0x188] sm:$0xff]  ;;  %v313_v43 = vld [vmem:[#allocation7 + $0x198] sm:$0xff]  ;;  %v862_v44 = vpack.c.bf16 %v308_v40, %v306_v39  ;;  %v103_v45 = vld [vmem:[#allocation2 + $0x10] sm:$0xff] }
  0x81   :  { %843 = vmatpush1.bf16.msra.mxu1 %v842_v59  ;;  %v864_v46 = vpack.c.bf16 %v313_v43, %v311_v42  ;;  %v310_v47 = vld [vmem:[#allocation7 + $0x180] sm:$0xff]  ;;  %v315_v49 = vld [vmem:[#allocation7 + $0x1a8] sm:$0xff]  ;;  %v317_v50 = vld [vmem:[#allocation7 + $0x1b8] sm:$0xff] }
  0x82   :  { %791 = vmatpush1.bf16.msra.mxu0 %v790_v24  ;;  %845 = vmatprep.subr.bf16.mxu1 %v844_v62  ;;  %v300_v24 = vld [vmem:[#allocation7 + $0x130] sm:$0xff]  ;;  %v868_v52 = vpack.c.bf16 %v317_v50, %v315_v49  ;;  %v319_v55 = vld [vmem:[#allocation7 + $0x1c8] sm:$0xff]  ;;  %v321_v56 = vld [vmem:[#allocation7 + $0x1d8] sm:$0xff] }
  0x83   :  { %793 = vmatprep.subr.bf16.mxu0 %v792_v29  ;;  %v854_v29 = vpack.c.bf16 %v300_v24, %v298_v23  ;;  %v316_v54 = vld [vmem:[#allocation7 + $0x1b0] sm:$0xff]  ;;  %v872_v58 = vpack.c.bf16 %v321_v56, %v319_v55  ;;  %v318_v59 = vld [vmem:[#allocation7 + $0x1c0] sm:$0xff]  ;;  %v323_v62 = vld [vmem:[#allocation7 + $0x1e8] sm:$0xff] }
  0x84   :  { %v325_v63 = vld [vmem:[#allocation7 + $0x1f8] sm:$0xff]  ;;  %v324_v2 = vld [vmem:[#allocation7 + $0x1f0] sm:$0xff]  ;;  %v420_v4 = vld [vmem:[#allocation8 + $0x8] sm:$0xff] }
  0x85   :  { %847 = vmatpush1.bf16.msra.mxu1 %v846_v7  ;;  %v876_v0 = vpack.c.bf16 %v325_v63, %v323_v62  ;;  %v422_v5 = vld [vmem:[#allocation8 + $0x18] sm:$0xff]  ;;  %v419_v6 = vld [vmem:[#allocation8] sm:$0xff]  ;;  %v424_v9 = vld [vmem:[#allocation8 + $0x28] sm:$0xff] }
  0x86   :  { %795 = vmatpush1.bf16.msra.mxu0 %v794_v36  ;;  %849 = vmatprep.subr.bf16.mxu1 %v848_v10  ;;  %v858_v36 = vpack.c.bf16 %v304_v33, %v302_v32  ;;  %v880_v7 = vpack.c.bf16 %v422_v5, %v420_v4  ;;  %v426_v10 = vld [vmem:[#allocation8 + $0x38] sm:$0xff]  ;;  %v425_v14 = vld [vmem:[#allocation8 + $0x30] sm:$0xff]  ;;  %v428_v15 = vld [vmem:[#allocation8 + $0x48] sm:$0xff] }
  0x87   :  { %797 = vmatprep.subr.bf16.mxu0 %v796_v41  ;;  %v104_v41 = vld [vmem:[#allocation2 + $0x18] sm:$0xff]  ;;  %v884_v12 = vpack.c.bf16 %v426_v10, %v424_v9  ;;  %v432_v21 = vld [vmem:[#allocation8 + $0x68] sm:$0xff]  ;;  %v433_v26 = vld [vmem:[#allocation8 + $0x70] sm:$0xff] }
  0x88   :  { %v430_v16 = vld [vmem:[#allocation8 + $0x58] sm:$0xff]  ;;  %v436_v27 = vld [vmem:[#allocation8 + $0x88] sm:$0xff]  ;;  %v437_v32 = vld [vmem:[#allocation8 + $0x90] sm:$0xff] }
  0x89   :  { %851 = vmatpush1.bf16.msra.mxu1 %v850_v19  ;;  %v888_v18 = vpack.c.bf16 %v430_v16, %v428_v15  ;;  %v427_v19 = vld [vmem:[#allocation8 + $0x40] sm:$0xff]  ;;  %v438_v28 = vld [vmem:[#allocation8 + $0x98] sm:$0xff]  ;;  %v440_v33 = vld [vmem:[#allocation8 + $0xa8] sm:$0xff] }
  0x8a   :  { %799 = vmatpush1.bf16.msra.mxu0 %v798_v48  ;;  %853 = vmatprep.subr.bf16.mxu1 %v852_v22  ;;  %v312_v48 = vld [vmem:[#allocation7 + $0x190] sm:$0xff]  ;;  %v434_v22 = vld [vmem:[#allocation8 + $0x78] sm:$0xff]  ;;  %v444_v39 = vld [vmem:[#allocation8 + $0xc8] sm:$0xff] }
  0x8b   :  { %801 = vmatprep.subr.bf16.mxu0 %v800_v53  ;;  %v866_v51 = vpack.c.bf16 %v312_v48, %v310_v47  ;;  %v314_v53 = vld [vmem:[#allocation7 + $0x1a0] sm:$0xff]  ;;  %v892_v24 = vpack.c.bf16 %v434_v22, %v432_v21  ;;  %v442_v34 = vld [vmem:[#allocation8 + $0xb8] sm:$0xff]  ;;  %v449_v50 = vld [vmem:[#allocation8 + $0xf0] sm:$0xff] }
  0x8c   :  { %v870_v57 = vpack.c.bf16 %v316_v54, %v314_v53  ;;  %v446_v40 = vld [vmem:[#allocation8 + $0xd8] sm:$0xff]  ;;  %v443_v43 = vld [vmem:[#allocation8 + $0xc0] sm:$0xff]  ;;  %v453_v56 = vld [vmem:[#allocation8 + $0x110] sm:$0xff] }
  0x8d   :  { %855 = vmatpush1.bf16.msra.mxu1 %v854_v29  ;;  %v904_v42 = vpack.c.bf16 %v446_v40, %v444_v39  ;;  %v447_v49 = vld [vmem:[#allocation8 + $0xe0] sm:$0xff]  ;;  %v457_v62 = vld [vmem:[#allocation8 + $0x130] sm:$0xff]  ;;  %v460_v63 = vld [vmem:[#allocation8 + $0x148] sm:$0xff] }
  0x8e   :  { %803 = vmatpush1.bf16.msra.mxu0 %v802_v60  ;;  %857 = vmatprep.subr.bf16.mxu1 %v856_v31  ;;  %v320_v60 = vld [vmem:[#allocation7 + $0x1d0] sm:$0xff]  ;;  %v435_v31 = vld [vmem:[#allocation8 + $0x80] sm:$0xff]  ;;  %v910_v53 = vpack.c.bf16 %v449_v50, %v447_v49  ;;  %v464_v5 = vld [vmem:[#allocation8 + $0x168] sm:$0xff] }
  0x8f   :  { %805 = vmatprep.subr.bf16.mxu0 %v804_v1  ;;  %v874_v61 = vpack.c.bf16 %v320_v60, %v318_v59  ;;  %v322_v1 = vld [vmem:[#allocation7 + $0x1e0] sm:$0xff]  ;;  %v898_v35 = vpack.c.bf16 %v437_v32, %v435_v31  ;;  %v461_v4 = vld [vmem:[#allocation8 + $0x150] sm:$0xff]  ;;  %v480_v49 = vld [vmem:[#allocation8 + $0x1e8] sm:$0xff] }
  0x90   :  { %v878_v3 = vpack.c.bf16 %v324_v2, %v322_v1  ;;  %v451_v55 = vld [vmem:[#allocation8 + $0x100] sm:$0xff]  ;;  %v465_v10 = vld [vmem:[#allocation8 + $0x170] sm:$0xff]  ;;  %v482_v50 = vld [vmem:[#allocation8 + $0x1f8] sm:$0xff] }
  0x91   :  { %859 = vmatpush1.bf16.msra.mxu1 %v858_v36  ;;  %v900_v36 = vpack.c.bf16 %v442_v34, %v440_v33  ;;  %v914_v59 = vpack.c.bf16 %v453_v56, %v451_v55  ;;  %v463_v9 = vld [vmem:[#allocation8 + $0x160] sm:$0xff]  ;;  %v469_v16 = vld [vmem:[#allocation8 + $0x190] sm:$0xff]  ;;  %v593_v56 = vld [vmem:[#allocation10 + $0x88] sm:$0xff] }
  0x92   :  { %807 = vmatpush1.bf16.msra.mxu0 %v806_v8  ;;  %861 = vmatprep.subr.bf16.mxu1 %v860_v38  ;;  %v421_v8 = vld [vmem:[#allocation8 + $0x10] sm:$0xff]  ;;  %v467_v15 = vld [vmem:[#allocation8 + $0x180] sm:$0xff] }
  0x93   :  { %809 = vmatprep.subr.bf16.mxu0 %v808_v13  ;;  %v882_v11 = vpack.c.bf16 %v421_v8, %v419_v6  ;;  %v423_v13 = vld [vmem:[#allocation8 + $0x20] sm:$0xff]  ;;  %v441_v38 = vld [vmem:[#allocation8 + $0xb0] sm:$0xff]  ;;  %v466_v6 = vld [vmem:[#allocation8 + $0x178] sm:$0xff] }
  0x94   :  { %v886_v17 = vpack.c.bf16 %v425_v14, %v423_v13  ;;  %v924_v8 = vpack.c.bf16 %v466_v6, %v464_v5  ;;  %v926_v13 = vpack.c.bf16 %v465_v10, %v463_v9  ;;  %v471_v21 = vld [vmem:[#allocation8 + $0x1a0] sm:$0xff]  ;;  %v473_v22 = vld [vmem:[#allocation8 + $0x1b0] sm:$0xff]  ;;  %v599_v9 = vld [vmem:[#allocation10 + $0xb8] sm:$0xff] }
  0x95   :  { %863 = vmatpush1.bf16.msra.mxu1 %v862_v44  ;;  %v445_v44 = vld [vmem:[#allocation8 + $0xd0] sm:$0xff]  ;;  %v592_v55 = vld [vmem:[#allocation10 + $0x80] sm:$0xff] }
  0x96   :  { %811 = vmatpush1.bf16.msra.mxu0 %v810_v20  ;;  %865 = vmatprep.subr.bf16.mxu1 %v864_v46  ;;  %v429_v20 = vld [vmem:[#allocation8 + $0x50] sm:$0xff]  ;;  %v450_v46 = vld [vmem:[#allocation8 + $0xf8] sm:$0xff]  ;;  %v906_v47 = vpack.c.bf16 %v445_v44, %v443_v43  ;;  %v580_v6 = vld [vmem:[#allocation10 + $0x20] sm:$0xff] }
  0x97   :  { %813 = vmatprep.subr.bf16.mxu0 %v812_v25  ;;  %v890_v23 = vpack.c.bf16 %v429_v20, %v427_v19  ;;  %v431_v25 = vld [vmem:[#allocation8 + $0x60] sm:$0xff]  ;;  %v930_v19 = vpack.c.bf16 %v469_v16, %v467_v15  ;;  %v601_v15 = vld [vmem:[#allocation10 + $0xc8] sm:$0xff] }
  0x98   :  { %v894_v29 = vpack.c.bf16 %v433_v26, %v431_v25  ;;  %v934_v25 = vpack.c.bf16 %v473_v22, %v471_v21  ;;  %v603_v21 = vld [vmem:[#allocation10 + $0xd8] sm:$0xff] }
  0x99   :  { %867 = vmatpush1.bf16.msra.mxu1 %v866_v51  ;;  %v452_v51 = vld [vmem:[#allocation8 + $0x108] sm:$0xff] }
  0x9a   :  { %815 = vmatpush1.bf16.msra.mxu0 %v814_v30  ;;  %869 = vmatprep.subr.bf16.mxu1 %v868_v52  ;;  %v896_v30 = vpack.c.bf16 %v438_v28, %v436_v27  ;;  %v454_v52 = vld [vmem:[#allocation8 + $0x118] sm:$0xff]  ;;  %v171_v27 = vlaneseq }
  0x9b   :  { %881 = vmatprep.subr.bf16.mxu0 %v880_v7  ;;  %v912_v54 = vpack.c.bf16 %v454_v52, %v452_v51  ;;  %v940_v51 = vpack.c.bf16 %v482_v50, %v480_v49  ;;  %v479_v52 = vld [vmem:[#allocation8 + $0x1e0] sm:$0xff]  ;;  %v606_v50 = vld [vmem:[#allocation10 + $0xf0] sm:$0xff] }
  0x9c   :  { %v172_v28 = vshrl.u32 %v171_v27, 7  ;;  %v605_v27 = vld [vmem:[#allocation10 + $0xe8] sm:$0xff] }
  0x9d   :  { %246 = vmatmul.mubr.f32.vlgmr.msra.gmra.mrb[0].mxu0 %v101_v37  ;;  %871 = vmatpush1.bf16.msra.mxu1 %v870_v57  ;;  %v439_v37 = vld [vmem:[#allocation8 + $0xa0] sm:$0xff]  ;;  %v456_v57 = vld [vmem:[#allocation8 + $0x128] sm:$0xff] }
  0x9e   :  { %251 = vmatprep.mubr.f32.mxu0 %v104_v41  ;;  %873 = vmatprep.subr.bf16.mxu1 %v872_v58  ;;  %v902_v41 = vpack.c.bf16 %v441_v38, %v439_v37  ;;  %v458_v58 = vld [vmem:[#allocation8 + $0x138] sm:$0xff]  ;;  %v1280_v31 = vsub.s32 1, %v172_v28 }
  0x9f   :  { %883 = vmatpush1.bf16.msra.mxu0 %v882_v11  ;;  %v916_v60 = vpack.c.bf16 %v458_v58, %v456_v57  ;;  %v468_v11 = vld [vmem:[#allocation8 + $0x188] sm:$0xff]  ;;  %v576_v57 = vld [vmem:[#allocation10] sm:$0xff]  ;;  %v944_v58 = vpack.c.bf16 %v593_v56, %v592_v55 }
  0xa0   :  { %885 = vmatprep.subr.bf16.mxu0 %v884_v12  ;;  %v470_v12 = vld [vmem:[#allocation8 + $0x198] sm:$0xff]  ;;  %v483_v56 = vld [vmem:[%s1318_s6] sm:$0x3] }
  0xa1   :  { %252 = vmatmul.mubr.f32.gmra.mrb[2].mxu0 %v103_v45  ;;  %875 = vmatpush1.bf16.msra.mxu1 %v874_v61  ;;  %v448_v45 = vld [vmem:[#allocation8 + $0xe8] sm:$0xff]  ;;  %v455_v61 = vld [vmem:[#allocation8 + $0x120] sm:$0xff]  ;;  %v928_v14 = vpack.c.bf16 %v470_v12, %v468_v11  ;;  %v582_v12 = vld [vmem:[#allocation10 + $0x30] sm:$0xff] }
  0xa2   :  { %877 = vmatprep.subr.bf16.mxu1 %v876_v0  ;;  %v908_v48 = vpack.c.bf16 %v450_v46, %v448_v45  ;;  %v462_v0 = vld [vmem:[#allocation8 + $0x158] sm:$0xff]  ;;  %v918_v1 = vpack.c.bf16 %v457_v62, %v455_v61  ;;  %v475_v46 = vld [vmem:[#allocation8 + $0x1c0] sm:$0xff] }
  0xa3   :  { %887 = vmatpush1.bf16.msra.mxu0 %v886_v17  ;;  %v920_v2 = vpack.c.bf16 %v462_v0, %v460_v63  ;;  %v472_v17 = vld [vmem:[#allocation8 + $0x1a8] sm:$0xff]  ;;  %v595_v61 = vld [vmem:[#allocation10 + $0x98] sm:$0xff]  ;;  %v578_v0 = vld [vmem:[#allocation10 + $0x10] sm:$0xff] }
  0xa4   :  { %889 = vmatprep.subr.bf16.mxu0 %v888_v18  ;;  %v474_v18 = vld [vmem:[#allocation8 + $0x1b8] sm:$0xff] }
  0xa5   :  { %879 = vmatpush1.bf16.msra.mxu1 %v878_v3  ;;  %v459_v3 = vld [vmem:[#allocation8 + $0x140] sm:$0xff]  ;;  %v932_v20 = vpack.c.bf16 %v474_v18, %v472_v17 }
  0xa6   :  { %v922_v7 = vpack.c.bf16 %v461_v4, %v459_v3  ;;  %945 = vmatprep.subr.bf16.mxu1 %v944_v58  ;;  %v597_v3 = vld [vmem:[#allocation10 + $0xa8] sm:$0xff]  ;;  %v584_v18 = vld [vmem:[#allocation10 + $0x40] sm:$0xff]  ;;  %v492_v58 = vrot.slane %v483_v56, %v1280_v31 }
  0xa7   :  { %891 = vmatpush1.bf16.msra.mxu0 %v890_v23  ;;  %v476_v23 = vld [vmem:[#allocation8 + $0x1c8] sm:$0xff] }
  0xa8   :  { %893 = vmatprep.subr.bf16.mxu0 %v892_v24  ;;  %v478_v24 = vld [vmem:[#allocation8 + $0x1d8] sm:$0xff] }
  0xa9   :  { %v936_v26 = vpack.c.bf16 %v478_v24, %v476_v23  ;;  %v586_v24 = vld [vmem:[#allocation10 + $0x50] sm:$0xff] }
  0xab   :  { %895 = vmatpush1.bf16.msra.mxu0 %v894_v29  ;;  %v1275_v29 = vsub.s32 0, %v172_v28 }
  0xac   :  { %897 = vmatprep.subr.bf16.mxu0 %v896_v30  ;;  %v169_v30 = vld [vmem:[%s1314_s2] sm:$0x3] }
  0xad   :  { %v174_v32 = vrot.slane %v169_v30, %v1275_v29  ;;  %v178_v33 = vrot.slane %v169_v30, %v1280_v31 }
  0xaf   :  { %899 = vmatpush1.bf16.msra.mxu0 %v898_v35 }
  0xb0   :  { %901 = vmatprep.subr.bf16.mxu0 %v900_v36 }
  0xb3   :  { %903 = vmatpush1.bf16.msra.mxu0 %v902_v41 }
  0xb4   :  { %905 = vmatprep.subr.bf16.mxu0 %v904_v42 }
  0xb7   :  { %907 = vmatpush1.bf16.msra.mxu0 %v906_v47  ;;  %v477_v47 = vld [vmem:[#allocation8 + $0x1d0] sm:$0xff] }
  0xb8   :  { %909 = vmatprep.subr.bf16.mxu0 %v908_v48  ;;  %v938_v48 = vpack.c.bf16 %v477_v47, %v475_v46  ;;  %v588_v47 = vld [vmem:[#allocation10 + $0x60] sm:$0xff] }
  0xbb   :  { %911 = vmatpush1.bf16.msra.mxu0 %v910_v53  ;;  %v481_v53 = vld [vmem:[#allocation8 + $0x1f0] sm:$0xff] }
  0xbc   :  { %913 = vmatprep.subr.bf16.mxu0 %v912_v54  ;;  %v942_v54 = vpack.c.bf16 %v481_v53, %v479_v52  ;;  %v590_v53 = vld [vmem:[#allocation10 + $0x70] sm:$0xff] }
  0xbf   :  { %915 = vmatpush1.bf16.msra.mxu0 %v914_v59  ;;  %v577_v59 = vld [vmem:[#allocation10 + $0x8] sm:$0xff] }
  0xc0   :  { %917 = vmatprep.subr.bf16.mxu0 %v916_v60  ;;  %v594_v60 = vld [vmem:[#allocation10 + $0x90] sm:$0xff]  ;;  %v946_v62 = vpack.c.bf16 %v577_v59, %v576_v57  ;;  %v488_v57 = vrot.slane %v483_v56, %v1275_v29 }
  0xc1   :  { %v948_v63 = vpack.c.bf16 %v595_v61, %v594_v60 }
  0xc3   :  { %919 = vmatpush1.bf16.msra.mxu0 %v918_v1  ;;  %v579_v1 = vld [vmem:[#allocation10 + $0x18] sm:$0xff] }
  0xc4   :  { %921 = vmatprep.subr.bf16.mxu0 %v920_v2  ;;  %v596_v2 = vld [vmem:[#allocation10 + $0xa0] sm:$0xff]  ;;  %v950_v4 = vpack.c.bf16 %v579_v1, %v578_v0 }
  0xc5   :  { %v952_v5 = vpack.c.bf16 %v597_v3, %v596_v2 }
  0xc7   :  { %923 = vmatpush1.bf16.msra.mxu0 %v922_v7  ;;  %v581_v7 = vld [vmem:[#allocation10 + $0x28] sm:$0xff] }
  0xc8   :  { %925 = vmatprep.subr.bf16.mxu0 %v924_v8  ;;  %v598_v8 = vld [vmem:[#allocation10 + $0xb0] sm:$0xff]  ;;  %v954_v10 = vpack.c.bf16 %v581_v7, %v580_v6 }
  0xc9   :  { %v956_v11 = vpack.c.bf16 %v599_v9, %v598_v8 }
  0xcb   :  { %927 = vmatpush1.bf16.msra.mxu0 %v926_v13  ;;  %v583_v13 = vld [vmem:[#allocation10 + $0x38] sm:$0xff] }
  0xcc   :  { %929 = vmatprep.subr.bf16.mxu0 %v928_v14  ;;  %v600_v14 = vld [vmem:[#allocation10 + $0xc0] sm:$0xff]  ;;  %v958_v16 = vpack.c.bf16 %v583_v13, %v582_v12 }
  0xcd   :  { %v960_v17 = vpack.c.bf16 %v601_v15, %v600_v14 }
  0xcf   :  { %931 = vmatpush1.bf16.msra.mxu0 %v930_v19  ;;  %v585_v19 = vld [vmem:[#allocation10 + $0x48] sm:$0xff] }
  0xd0   :  { %933 = vmatprep.subr.bf16.mxu0 %v932_v20  ;;  %v602_v20 = vld [vmem:[#allocation10 + $0xd0] sm:$0xff]  ;;  %v962_v22 = vpack.c.bf16 %v585_v19, %v584_v18 }
  0xd1   :  { %v964_v23 = vpack.c.bf16 %v603_v21, %v602_v20 }
  0xd3   :  { %935 = vmatpush1.bf16.msra.mxu0 %v934_v25  ;;  %v587_v25 = vld [vmem:[#allocation10 + $0x58] sm:$0xff] }
  0xd4   :  { %937 = vmatprep.subr.bf16.mxu0 %v936_v26  ;;  %v604_v26 = vld [vmem:[#allocation10 + $0xe0] sm:$0xff]  ;;  %v966_v28 = vpack.c.bf16 %v587_v25, %v586_v24 }
  0xd5   :  { %v968_v30 = vpack.c.bf16 %v605_v27, %v604_v26 }
  0xd7   :  { %939 = vmatpush1.bf16.msra.mxu0 %v938_v48  ;;  %v589_v48 = vld [vmem:[#allocation10 + $0x68] sm:$0xff] }
  0xd8   :  { %941 = vmatprep.subr.bf16.mxu0 %v940_v51  ;;  %v970_v49 = vpack.c.bf16 %v589_v48, %v588_v47  ;;  %v607_v51 = vld [vmem:[#allocation10 + $0xf8] sm:$0xff] }
  0xd9   :  { %v972_v52 = vpack.c.bf16 %v607_v51, %v606_v50 }
  0xdb   :  { %943 = vmatpush1.bf16.msra.mxu0 %v942_v54  ;;  %v591_v54 = vld [vmem:[#allocation10 + $0x78] sm:$0xff] }
  0xdc   :  { %v974_v55 = vpack.c.bf16 %v591_v54, %v590_v53 }
 0x170   :  { %v247_v34 = vpop.f32.mrb[0].mxu0 }
 0x171   :  { %v248_v35 = vadd.f32 %v247_v34, %v174_v32  ;;  %v249_v36 = vpop.f32.mrb[1].mxu0 }
 0x172   :  { %v250_v37 = vadd.f32 %v249_v36, %v178_v33 }
 0x173   :  { %v258_v40 = vmax.f32 %v248_v35, 0.0 }
 0x174   :  { %v253_v38 = vpop.f32.mrb[2].mxu0  ;;  %v259_v39 = vmax.f32 %v250_v37, 0.0 }
 0x175   :  { %v254_v41 = vadd.f32 %v253_v38, %v174_v32  ;;  %v255_v42 = vpop.f32.mrb[3].mxu0  ;;  %v326_v32 = vld [vmem:[%s1316_s4] sm:$0x3] }
 0x176   :  { %v256_v43 = vadd.f32 %v255_v42, %v178_v33  ;;  %402 = vmatprep.mubr.f32.mxu1 %v259_v39  ;;  %v331_v33 = vrot.slane %v326_v32, %v1275_v29  ;;  %v335_v34 = vrot.slane %v326_v32, %v1280_v31  ;;  %v713_v29 = vld [vmem:[%s1320_s8] ss:$0 sm:$0xff] }
 0x177   :  { %403 = vmatmul.mubr.f32.vlgmr.msra.gmra.mrb[0].mxu1 %v258_v40  ;;  %v260_v45 = vmax.f32 %v254_v41, 0.0 }
 0x178   :  { %v261_v44 = vmax.f32 %v256_v43, 0.0  ;;  %947 = vmatpush3.bf16.msra.mxu1 %v946_v62 }
 0x179   :  { %949 = vmatprep.subr.bf16.mxu1 %v948_v63 }
 0x17a   :  { %408 = vmatprep.mubr.f32.mxu1 %v261_v44 }
 0x17b   :  { %409 = vmatmul.mubr.f32.gmra.mrb[2].mxu1 %v260_v45 }
 0x17c   :  { %951 = vmatpush3.bf16.msra.mxu1 %v950_v4 }
 0x17d   :  { %953 = vmatprep.subr.bf16.mxu1 %v952_v5 }
 0x180   :  { %955 = vmatpush3.bf16.msra.mxu1 %v954_v10 }
 0x181   :  { %957 = vmatprep.subr.bf16.mxu1 %v956_v11 }
 0x184   :  { %959 = vmatpush3.bf16.msra.mxu1 %v958_v16 }
 0x185   :  { %961 = vmatprep.subr.bf16.mxu1 %v960_v17 }
 0x188   :  { %963 = vmatpush3.bf16.msra.mxu1 %v962_v22 }
 0x189   :  { %965 = vmatprep.subr.bf16.mxu1 %v964_v23 }
 0x18c   :  { %967 = vmatpush3.bf16.msra.mxu1 %v966_v28 }
 0x18d   :  { %969 = vmatprep.subr.bf16.mxu1 %v968_v30 }
 0x190   :  { %971 = vmatpush3.bf16.msra.mxu1 %v970_v49 }
 0x191   :  { %973 = vmatprep.subr.bf16.mxu1 %v972_v52 }
 0x194   :  { %975 = vmatpush3.bf16.msra.mxu1 %v974_v55 }
 0x24a   :  { %v404_v35 = vpop.f32.mrb[0].mxu1 }
 0x24b   :  { %v405_v36 = vadd.f32 %v404_v35, %v331_v33  ;;  %v406_v37 = vpop.f32.mrb[1].mxu1 }
 0x24c   :  { %v407_v38 = vadd.f32 %v406_v37, %v335_v34 }
 0x24d   :  { %v415_v41 = vmax.f32 %v405_v36, 0.0 }
 0x24e   :  { %v416_v39 = vmax.f32 %v407_v38, 0.0  ;;  %v410_v40 = vpop.f32.mrb[2].mxu1 }
 0x24f   :  { %v411_v42 = vadd.f32 %v410_v40, %v331_v33  ;;  %v412_v43 = vpop.f32.mrb[3].mxu1 }
 0x250   :  { %v413_v44 = vadd.f32 %v412_v43, %v335_v34  ;;  %559 = vmatprep.mubr.f32.mxu0 %v416_v39 }
 0x251   :  { %560 = vmatmul.mubr.f32.vlgmr.msra.gmra.mrb[4].mxu0 %v415_v41  ;;  %v417_v46 = vmax.f32 %v411_v42, 0.0 }
 0x252   :  { %v418_v45 = vmax.f32 %v413_v44, 0.0 }
 0x254   :  { %565 = vmatprep.mubr.f32.mxu0 %v418_v45 }
 0x255   :  { %566 = vmatmul.mubr.f32.gmra.mrb[6].mxu0 %v417_v46 }
 0x324   :  { %v561_v59 = vpop.f32.mrb[4].mxu0 }
 0x325   :  { %v562_v60 = vadd.f32 %v561_v59, %v488_v57  ;;  %v563_v61 = vpop.f32.mrb[5].mxu0 }
 0x326   :  { %v564_v62 = vadd.f32 %v563_v61, %v492_v58 }
 0x327   :  { %v572_v1 = vmax.f32 %v562_v60, 0.0 }
 0x328   :  { %v573_v63 = vmax.f32 %v564_v62, 0.0  ;;  %v567_v0 = vpop.f32.mrb[6].mxu0 }
 0x329   :  { %v568_v2 = vadd.f32 %v567_v0, %v488_v57  ;;  %v569_v3 = vpop.f32.mrb[7].mxu0 }
 0x32a   :  { %v570_v4 = vadd.f32 %v569_v3, %v492_v58  ;;  %679 = vmatprep.mubr.f32.mxu1 %v573_v63 }
 0x32b   :  { %680 = vmatmul.mubr.f32.vlgmr.msra.gmra.mrb[4].mxu1 %v572_v1  ;;  %v574_v6 = vmax.f32 %v568_v2, 0.0 }
 0x32c   :  { %v575_v5 = vmax.f32 %v570_v4, 0.0 }
 0x32e   :  { %684 = vmatprep.mubr.f32.mxu1 %v575_v5 }
 0x32f   :  { %685 = vmatmul.mubr.f32.gmra.mrb[6].mxu1 %v574_v6 }
 0x3fe   :  { %v746_v7 = vpop.f32.mrb[4].mxu1 }
 0x3ff   :  { %v747_v31 = vpop.f32.mrb[5].mxu1 }
 0x400   :  { %v748_v8 = vadd.f32 %v747_v31, %v746_v7 }
 0x402   :  { %v682_v9 = vadd.f32 %v748_v8, %v713_v29  ;;  %v749_v10 = vpop.f32.mrb[6].mxu1 }
 0x403   :  { %v750_v11 = vpop.f32.mrb[7].mxu1 }
 0x404   :  { %v690_v12 = vmax.f32 %v682_v9, 0.0  ;;  %v751_v13 = vadd.f32 %v750_v11, %v749_v10 }
 0x406   :  { %692 = vst [vmem:[#allocation11] sm:$0xff] %v690_v12  ;;  %v687_v14 = vadd.f32 %v751_v13, %v713_v29 }
 0x408   :  { %v691_v15 = vmax.f32 %v687_v14, 0.0 }
 0x40a   :  { %693 = vst [vmem:[#allocation11 + $0x8] sm:$0xff] %v691_v15 }
 0x40b   :  { %1107 = shalt.err (!%p1104_p2)
}
 0x40c   :  { %s1108_s14 = scalar_lea.hbm %s1321_s9, 256 }
 0x40d   :  { %p1109_p3 = scmp.ne.s32.totalorder %s1321_s9, %s1108_s14  ;;  %p1112_p4 = scmp.lt.u32.totalorder %s1108_s14, %s1321_s9 }
 0x40f   :  { %p1114_p5 = pnand %p1112_p4, %p1109_p3 }
 0x411   :  { %1117 = shalt.err (!%p1114_p5)
}
 0x412   :  { %705 = dma.vmem_to_hbm [thread:$0]  %s700_s13, 256, %s1321_s9, [#allocation4], %s1133_s3, %s1133_s3, %s1134_s21  }
 0x413   :  { %1124 = dma.done.wait [#allocation4], 256  }
 0x414   :  { %1125 = vsyncadd [#allocation4], 4294967040 }
 0x415   :  { %709 = vsyncpa [#allocation3], 1 }
 0x416   :  { %710 = vsyncpa [#allocation6], 1 }
 0x417   :  { %711 = vsyncpa [#allocation9], 1 }
 0x418   :  { %712 = vsyncpa [#allocation4], 1 }

</bundles_post_ra>
